<compile_context>
chip_gen: v5e
topology: v5e:2x2
jax: 0.10.0
libtpu: 0.0.40
codegen_flags: <defaults>
</compile_context>

<pallas_src>
import functools

import jax
import jax.numpy as jnp
from jax.experimental import pallas as pl
from jax.experimental.pallas import tpu as pltpu


def _round_up(n, m):
    return ((n + m - 1) // m) * m


def _srl(v, k):
    """Logical right shift of an int32 vector by a static amount k (emulated)."""
    return jnp.bitwise_and(jnp.right_shift(v, k), jnp.int32((1 << (32 - k)) - 1))


def _keep_mask(shape, seed, salt, thresh):
    """Deterministic per-element Bernoulli(keep_p) mask from a counter hash.

    Pure integer VPU ops (iota / mul / xor / shift / cmp) -> lowers on Mosaic
    and in interpret mode alike; no hardware PRNG primitives required.
    """
    r = jax.lax.broadcasted_iota(jnp.int32, shape, 0)
    c = jax.lax.broadcasted_iota(jnp.int32, shape, 1)
    z = r * jnp.int32(shape[1]) + c               # unique element id in the layer
    z = z * jnp.int32(-1640531535)                # 0x9E3779B1 (golden ratio)
    z = z + seed
    z = z ^ jnp.int32(salt)
    # murmur3 fmix32 finalizer (logical shifts emulated via mask)
    z = z ^ _srl(z, 16)
    z = z * jnp.int32(-2048144789)                # 0x85EBCA6B
    z = z ^ _srl(z, 13)
    z = z * jnp.int32(-1028477387)                # 0xC2B2AE35
    z = z ^ _srl(z, 16)
    return z < jnp.int32(thresh)                  # P(keep) = keep_p


# ----------------------------------------------------------------------------
# Single fused kernel: [BN -> Linear -> ReLU -> Dropout]* -> BN -> Linear
# ----------------------------------------------------------------------------
def _fused_mlp_kernel(*refs, n_layers, batch_valid, batch_padded, in_valid,
                      drop_p, eps, training):
    seed_ref = refs[0]
    x_ref = refs[1]
    layer_refs = refs[2:2 + 4 * n_layers]
    o_ref = refs[2 + 4 * n_layers]
    h0_ref = refs[3 + 4 * n_layers]               # VMEM scratch (Bp, D0p) f32

    use_dropout = bool(training) and drop_p > 0.0 and n_layers > 1
    keep_p = 1.0 - drop_p
    inv_keep = jnp.float32(1.0 / keep_p) if keep_p > 0.0 else jnp.float32(0.0)
    thresh = max(-2147483648,
                 min(int(round(keep_p * 4294967296.0)) - 2147483648, 2147483647))
    inv_b = jnp.float32(1.0 / batch_valid)

    seed = seed_ref[0] if use_dropout else None

    # ---- Zero-pad the input into VMEM scratch (replaces the host-side pad op).
    h0_ref[...] = jnp.zeros_like(h0_ref)
    h0_ref[0:batch_valid, 0:in_valid] = x_ref[...].astype(jnp.float32)
    h = h0_ref[...]                               # (Bp, D0p); padding is zero

    need_row_mask = batch_valid < batch_padded
    if need_row_mask:
        row_mask = (jax.lax.broadcasted_iota(jnp.int32, (batch_padded, 1), 0)
                    < batch_valid)

    for l in range(n_layers):
        gamma = layer_refs[4 * l][...]            # (1, Din_p) f32
        beta = layer_refs[4 * l + 1][...]         # (1, Din_p) f32
        w = layer_refs[4 * l + 2][...]            # (Din_p, Dout_p) bf16
        bias = layer_refs[4 * l + 3][...]         # (1, Dout_p) f32

        # ---- BatchNorm1d, training mode: centered, numerically stable stats.
        # Padded rows/cols of h are exactly zero, so plain sums divided by the
        # *valid* batch size give the true mean; padded rows are masked out of
        # the centered term so the variance is exact and never negative.
        mean = jnp.sum(h, axis=0, keepdims=True) * inv_b
        centered = h - mean
        if need_row_mask:
            centered = jnp.where(row_mask, centered, 0.0)
        var = jnp.sum(centered * centered, axis=0, keepdims=True) * inv_b
        scale = gamma * jax.lax.rsqrt(var + eps)  # gamma folded into the scale
        hn = centered * scale + beta              # f32 elementwise (VPU)

        # ---- Linear on the MXU: bf16 operands, f32 accumulation.
        y = jnp.dot(hn.astype(jnp.bfloat16), w,
                    preferred_element_type=jnp.float32) + bias

        if l < n_layers - 1:
            y = jnp.maximum(y, 0.0)               # ReLU
            if use_dropout:
                salt = ((l + 1) * 0x3C6EF35F) & 0xFFFFFFFF
                if salt >= 2 ** 31:
                    salt -= 2 ** 32
                keep = _keep_mask(y.shape, seed, salt, thresh)
                # inverted dropout; 1/(1-p) scale folded into the kept branch
                y = jnp.where(keep, y * inv_keep, 0.0)
            if need_row_mask:
                # keep padded batch rows at exactly zero so the next layer's
                # batch statistics stay correct
                y = jnp.where(row_mask, y, 0.0)
        h = y

    o_ref[...] = h.astype(o_ref.dtype)


# ----------------------------------------------------------------------------
# Parameter construction (mirrors MLP.__init__) — padded & packed for the kernel
# ----------------------------------------------------------------------------
def init_mlp_params(key, n_inputs, n_hidden, n_classes):
    """Returns (params, dims).

    params[l] = (gamma, beta, w_t, b):
      gamma, beta : (1, Din_p)  f32        BatchNorm1d affine
      w_t         : (Din_p, Dout_p) bf16   Linear weight, transposed, zero-padded
      b           : (1, Dout_p) f32
    dims = [n_inputs, *n_hidden, n_classes] (unpadded logical sizes).
    """
    dims = [n_inputs] + list(n_hidden) + [n_classes]
    params = []
    for l in range(len(dims) - 1):
        din, dout = dims[l], dims[l + 1]
        din_p, dout_p = _round_up(din, 128), _round_up(dout, 128)
        key, kw, kb = jax.random.split(key, 3)
        gamma = jnp.ones((1, din_p), jnp.float32)
        beta = jnp.zeros((1, din_p), jnp.float32)
        bound = 1.0 / float(din) ** 0.5                    # nn.Linear-style init
        w = jax.random.uniform(kw, (dout, din), jnp.float32, -bound, bound)
        b = jax.random.uniform(kb, (dout,), jnp.float32, -bound, bound)
        w_t = jnp.zeros((din_p, dout_p), jnp.float32).at[:din, :dout].set(w.T)
        w_t = w_t.astype(jnp.bfloat16)                     # pre-cast once at init
        b_p = jnp.zeros((1, dout_p), jnp.float32).at[0, :dout].set(b)
        params.append((gamma, beta, w_t, b_p))
    return params, dims


# ----------------------------------------------------------------------------
# Forward pass: one pallas_call for the whole network
# ----------------------------------------------------------------------------
def mlp_forward(x, params, dims, seed, *, drop_p=0.5, eps=1e-5, training=True):
    B, din = x.shape
    n_layers = len(params)
    din_p = params[0][0].shape[1]
    dout_p = params[-1][3].shape[1]
    n_classes = dims[-1]
    b_p = _round_up(max(B, 1), 8)

    seed_arr = jnp.asarray([seed], dtype=jnp.int32)

    flat_inputs = [seed_arr, x]
    for gamma, beta, w_t, b in params:
        flat_inputs.extend([gamma, beta, w_t, b])

    smem = pl.BlockSpec(memory_space=pltpu.MemorySpace.SMEM)
    vmem = pl.BlockSpec(memory_space=pltpu.MemorySpace.VMEM)

    kernel = functools.partial(
        _fused_mlp_kernel,
        n_layers=n_layers,
        batch_valid=B,
        batch_padded=b_p,
        in_valid=din,
        drop_p=float(drop_p),
        eps=float(eps),
        training=bool(training),
    )

    # ---- Explicit VMEM budget: v5e's default scoped limit is ~16 MiB even
    # though 128 MiB is physical; v7x only has 64 MiB physical.  Size the limit
    # from the real footprint with headroom, clamped to a per-chip-safe range.
    est = x.size * 4 + b_p * dout_p * 4 + b_p * din_p * 4      # x, out, scratch
    max_d = din_p
    for gamma, beta, w_t, b in params:
        est += gamma.size * 4 + beta.size * 4 + w_t.size * 2 + b.size * 4
        max_d = max(max_d, w_t.shape[1])
    est += 3 * b_p * max_d * 4                                 # live f32 temps
    vmem_limit = int(min(max(2 * est + (4 << 20), 32 << 20), 60 << 20))

    out = pl.pallas_call(
        kernel,
        out_shape=jax.ShapeDtypeStruct((b_p, dout_p), jnp.float32),
        in_specs=[smem] + [vmem] * (len(flat_inputs) - 1),
        out_specs=vmem,
        scratch_shapes=[pltpu.VMEM((b_p, din_p), jnp.float32)],
        compiler_params=pltpu.CompilerParams(vmem_limit_bytes=vmem_limit),
    )(*flat_inputs)

    return out[:B, :n_classes]


# ----------------------------------------------------------------------------
# Pure-JAX reference (dropout disabled) for a numerical sanity check
# ----------------------------------------------------------------------------
def _mlp_reference_no_dropout(x, params, dims, eps=1e-5):
    B = x.shape[0]
    din_p = params[0][0].shape[1]
    h = jnp.zeros((B, din_p), jnp.float32).at[:, :dims[0]].set(x)
    for l, (gamma, beta, w_t, b) in enumerate(params):
        mean = jnp.mean(h, axis=0, keepdims=True)
        centered = h - mean
        var = jnp.mean(centered * centered, axis=0, keepdims=True)
        scale = gamma * jax.lax.rsqrt(var + eps)
        hn = centered * scale + beta
        y = jnp.dot(hn.astype(jnp.bfloat16), w_t,
                    preferred_element_type=jnp.float32) + b
        if l < len(params) - 1:
            y = jnp.maximum(y, 0.0)
        h = y
    return h[:, :dims[-1]]


if __name__ == "__main__":
    # Small shapes consistent with the module: batch=8, n_inputs=32,
    # n_hidden=[64], n_classes=10.
    batch, n_inputs, n_hidden, n_classes = 8, 32, [64], 10

    key = jax.random.PRNGKey(0)
    kx, kp = jax.random.split(key)

    x = jax.random.normal(kx, (batch, n_inputs), jnp.float32)
    params, dims = init_mlp_params(kp, n_inputs, n_hidden, n_classes)

    # Training-mode forward (batch-stat BN, ReLU, in-kernel hash dropout).
    out = mlp_forward(x, params, dims, seed=42, training=True)
    out = jax.block_until_ready(out)
    assert out.shape == (batch, n_classes), out.shape
    assert out.dtype == jnp.float32
    assert bool(jnp.all(jnp.isfinite(out)))

    # Numerical sanity vs. the pure-JAX reference on the dropout-free path.
    out_nd = mlp_forward(x, params, dims, seed=0, training=False)
    out_nd = jax.block_until_ready(out_nd)
    ref = _mlp_reference_no_dropout(x.astype(jnp.float32), params, dims)
    assert jnp.allclose(out_nd, ref, rtol=2e-2, atol=2e-2), (
        float(jnp.max(jnp.abs(out_nd - ref))))

    print("KERNEL_OK")
</pallas_src>

<mosaic_0001>
module attributes {stable_mosaic.version = 11 : i64} {
  func.func @_fused_mlp_kernel(%arg0: memref<1xi32, #tpu.memory_space<smem>>, %arg1: memref<8x32xf32, #tpu.memory_space<vmem>>, %arg2: memref<1x128xf32, #tpu.memory_space<vmem>>, %arg3: memref<1x128xf32, #tpu.memory_space<vmem>>, %arg4: memref<128x128xbf16, #tpu.memory_space<vmem>>, %arg5: memref<1x128xf32, #tpu.memory_space<vmem>>, %arg6: memref<1x128xf32, #tpu.memory_space<vmem>>, %arg7: memref<1x128xf32, #tpu.memory_space<vmem>>, %arg8: memref<128x128xbf16, #tpu.memory_space<vmem>>, %arg9: memref<1x128xf32, #tpu.memory_space<vmem>>, %arg10: memref<8x128xf32, #tpu.memory_space<vmem>>, %arg11: memref<8x128xf32, #tpu.memory_space<vmem>>) attributes {dimension_semantics = [], scalar_prefetch = 0 : i64, scratch_operands = 1 : i64, tpu.core_type = #tpu.core_type<tc>} {
    %c0 = arith.constant 0 : index
    %0 = memref.load %arg0[%c0] : memref<1xi32, #tpu.memory_space<smem>>
    %cst = arith.constant 0.000000e+00 : f32
    %1 = vector.broadcast %cst : f32 to vector<8x128xf32>
    %c0_0 = arith.constant 0 : index
    %c0_1 = arith.constant 0 : index
    %2 = vector.load %arg11[%c0_0, %c0_1] : memref<8x128xf32, #tpu.memory_space<vmem>>, vector<8x128xf32>
    tpu.vector_store %arg11[%c0_0, %c0_1], %1 {strides = array<i32>} : memref<8x128xf32, #tpu.memory_space<vmem>>, vector<8x128xf32>,
    %c0_2 = arith.constant 0 : index
    %c0_3 = arith.constant 0 : index
    %3 = vector.load %arg1[%c0_2, %c0_3] : memref<8x32xf32, #tpu.memory_space<vmem>>, vector<8x32xf32>
    %c0_4 = arith.constant 0 : index
    %c0_5 = arith.constant 0 : index
    %4 = vector.load %arg11[%c0_4, %c0_5] : memref<8x128xf32, #tpu.memory_space<vmem>>, vector<8x32xf32>
    tpu.vector_store %arg11[%c0_4, %c0_5], %3 {strides = array<i32>} : memref<8x128xf32, #tpu.memory_space<vmem>>, vector<8x32xf32>,
    %c0_6 = arith.constant 0 : index
    %c0_7 = arith.constant 0 : index
    %5 = vector.load %arg11[%c0_6, %c0_7] : memref<8x128xf32, #tpu.memory_space<vmem>>, vector<8x128xf32>
    %c0_8 = arith.constant 0 : index
    %c0_9 = arith.constant 0 : index
    %6 = vector.load %arg2[%c0_8, %c0_9] : memref<1x128xf32, #tpu.memory_space<vmem>>, vector<1x128xf32>
    %c0_10 = arith.constant 0 : index
    %c0_11 = arith.constant 0 : index
    %7 = vector.load %arg3[%c0_10, %c0_11] : memref<1x128xf32, #tpu.memory_space<vmem>>, vector<1x128xf32>
    %c0_12 = arith.constant 0 : index
    %c0_13 = arith.constant 0 : index
    %8 = vector.load %arg4[%c0_12, %c0_13] : memref<128x128xbf16, #tpu.memory_space<vmem>>, vector<128x128xbf16>
    %c0_14 = arith.constant 0 : index
    %c0_15 = arith.constant 0 : index
    %9 = vector.load %arg5[%c0_14, %c0_15] : memref<1x128xf32, #tpu.memory_space<vmem>>, vector<1x128xf32>
    %cst_16 = arith.constant dense<0.000000e+00> : vector<128xf32>
    %10 = vector.multi_reduction <add>, %5, %cst_16 [0] : vector<8x128xf32> to vector<128xf32>
    %11 = vector.shape_cast %10 : vector<128xf32> to vector<1x128xf32>
    %cst_17 = arith.constant 1.250000e-01 : f32
    %12 = vector.broadcast %cst_17 : f32 to vector<1x128xf32>
    %13 = arith.mulf %11, %12 : vector<1x128xf32>
    %14 = vector.broadcast %13 : vector<1x128xf32> to vector<8x128xf32>
    %15 = arith.subf %5, %14 : vector<8x128xf32>
    %16 = arith.mulf %15, %15 : vector<8x128xf32>
    %cst_18 = arith.constant dense<0.000000e+00> : vector<128xf32>
    %17 = vector.multi_reduction <add>, %16, %cst_18 [0] : vector<8x128xf32> to vector<128xf32>
    %18 = vector.shape_cast %17 : vector<128xf32> to vector<1x128xf32>
    %cst_19 = arith.constant 1.250000e-01 : f32
    %19 = vector.broadcast %cst_19 : f32 to vector<1x128xf32>
    %20 = arith.mulf %18, %19 : vector<1x128xf32>
    %cst_20 = arith.constant 9.99999974E-6 : f32
    %21 = vector.broadcast %cst_20 : f32 to vector<1x128xf32>
    %22 = arith.addf %20, %21 : vector<1x128xf32>
    %23 = math.rsqrt %22 : vector<1x128xf32>
    %24 = arith.mulf %6, %23 : vector<1x128xf32>
    %25 = vector.broadcast %24 : vector<1x128xf32> to vector<8x128xf32>
    %26 = arith.mulf %15, %25 : vector<8x128xf32>
    %27 = vector.broadcast %7 : vector<1x128xf32> to vector<8x128xf32>
    %28 = arith.addf %26, %27 : vector<8x128xf32>
    %29 = arith.truncf %28 : vector<8x128xf32> to vector<8x128xbf16>
    %cst_21 = arith.constant dense<0.000000e+00> : vector<8x128xf32>
    %30 = tpu.matmul %29, %8, %cst_21 {dimension_numbers = #tpu.dot_dimension_numbers<[1], [0], [0], [1], [0, 0, 1, 1], [], []>} : vector<8x128xbf16>, vector<128x128xbf16>, vector<8x128xf32> -> vector<8x128xf32>
    %31 = vector.broadcast %9 : vector<1x128xf32> to vector<8x128xf32>
    %32 = arith.addf %30, %31 : vector<8x128xf32>
    %cst_22 = arith.constant 0.000000e+00 : f32
    %33 = vector.broadcast %cst_22 : f32 to vector<8x128xf32>
    %34 = arith.maximumf %32, %33 : vector<8x128xf32>
    %35 = tpu.iota {dimensions = array<i32: 0>} : vector<8x128xi32>
    %36 = tpu.iota {dimensions = array<i32: 1>} : vector<8x128xi32>
    %c128_i32 = arith.constant 128 : i32
    %37 = vector.broadcast %c128_i32 : i32 to vector<8x128xi32>
    %38 = arith.muli %35, %37 : vector<8x128xi32>
    %39 = arith.addi %38, %36 : vector<8x128xi32>
    %c-1640531535_i32 = arith.constant -1640531535 : i32
    %40 = vector.broadcast %c-1640531535_i32 : i32 to vector<8x128xi32>
    %41 = arith.muli %39, %40 : vector<8x128xi32>
    %42 = vector.broadcast %0 : i32 to vector<8x128xi32>
    %43 = arith.addi %41, %42 : vector<8x128xi32>
    %c1013904223_i32 = arith.constant 1013904223 : i32
    %44 = vector.broadcast %c1013904223_i32 : i32 to vector<8x128xi32>
    %45 = arith.xori %43, %44 : vector<8x128xi32>
    %c16_i32 = arith.constant 16 : i32
    %46 = vector.broadcast %c16_i32 : i32 to vector<8x128xi32>
    %47 = arith.shrsi %45, %46 : vector<8x128xi32>
    %c65535_i32 = arith.constant 65535 : i32
    %48 = vector.broadcast %c65535_i32 : i32 to vector<8x128xi32>
    %49 = arith.andi %47, %48 : vector<8x128xi32>
    %50 = arith.xori %45, %49 : vector<8x128xi32>
    %c-2048144789_i32 = arith.constant -2048144789 : i32
    %51 = vector.broadcast %c-2048144789_i32 : i32 to vector<8x128xi32>
    %52 = arith.muli %50, %51 : vector<8x128xi32>
    %c13_i32 = arith.constant 13 : i32
    %53 = vector.broadcast %c13_i32 : i32 to vector<8x128xi32>
    %54 = arith.shrsi %52, %53 : vector<8x128xi32>
    %c524287_i32 = arith.constant 524287 : i32
    %55 = vector.broadcast %c524287_i32 : i32 to vector<8x128xi32>
    %56 = arith.andi %54, %55 : vector<8x128xi32>
    %57 = arith.xori %52, %56 : vector<8x128xi32>
    %c-1028477387_i32 = arith.constant -1028477387 : i32
    %58 = vector.broadcast %c-1028477387_i32 : i32 to vector<8x128xi32>
    %59 = arith.muli %57, %58 : vector<8x128xi32>
    %c16_i32_23 = arith.constant 16 : i32
    %60 = vector.broadcast %c16_i32_23 : i32 to vector<8x128xi32>
    %61 = arith.shrsi %59, %60 : vector<8x128xi32>
    %c65535_i32_24 = arith.constant 65535 : i32
    %62 = vector.broadcast %c65535_i32_24 : i32 to vector<8x128xi32>
    %63 = arith.andi %61, %62 : vector<8x128xi32>
    %64 = arith.xori %59, %63 : vector<8x128xi32>
    %c0_i32 = arith.constant 0 : i32
    %65 = vector.broadcast %c0_i32 : i32 to vector<8x128xi32>
    %66 = arith.cmpi slt, %64, %65 : vector<8x128xi32>
    %cst_25 = arith.constant 2.000000e+00 : f32
    %67 = vector.broadcast %cst_25 : f32 to vector<8x128xf32>
    %68 = arith.mulf %34, %67 : vector<8x128xf32>
    %cst_26 = arith.constant 0.000000e+00 : f32
    %69 = vector.broadcast %cst_26 : f32 to vector<8x128xf32>
    %70 = arith.select %66, %68, %69 : vector<8x128xi1>, vector<8x128xf32>
    %c0_27 = arith.constant 0 : index
    %c0_28 = arith.constant 0 : index
    %71 = vector.load %arg6[%c0_27, %c0_28] : memref<1x128xf32, #tpu.memory_space<vmem>>, vector<1x128xf32>
    %c0_29 = arith.constant 0 : index
    %c0_30 = arith.constant 0 : index
    %72 = vector.load %arg7[%c0_29, %c0_30] : memref<1x128xf32, #tpu.memory_space<vmem>>, vector<1x128xf32>
    %c0_31 = arith.constant 0 : index
    %c0_32 = arith.constant 0 : index
    %73 = vector.load %arg8[%c0_31, %c0_32] : memref<128x128xbf16, #tpu.memory_space<vmem>>, vector<128x128xbf16>
    %c0_33 = arith.constant 0 : index
    %c0_34 = arith.constant 0 : index
    %74 = vector.load %arg9[%c0_33, %c0_34] : memref<1x128xf32, #tpu.memory_space<vmem>>, vector<1x128xf32>
    %cst_35 = arith.constant dense<0.000000e+00> : vector<128xf32>
    %75 = vector.multi_reduction <add>, %70, %cst_35 [0] : vector<8x128xf32> to vector<128xf32>
    %76 = vector.shape_cast %75 : vector<128xf32> to vector<1x128xf32>
    %cst_36 = arith.constant 1.250000e-01 : f32
    %77 = vector.broadcast %cst_36 : f32 to vector<1x128xf32>
    %78 = arith.mulf %76, %77 : vector<1x128xf32>
    %79 = vector.broadcast %78 : vector<1x128xf32> to vector<8x128xf32>
    %80 = arith.subf %70, %79 : vector<8x128xf32>
    %81 = arith.mulf %80, %80 : vector<8x128xf32>
    %cst_37 = arith.constant dense<0.000000e+00> : vector<128xf32>
    %82 = vector.multi_reduction <add>, %81, %cst_37 [0] : vector<8x128xf32> to vector<128xf32>
    %83 = vector.shape_cast %82 : vector<128xf32> to vector<1x128xf32>
    %cst_38 = arith.constant 1.250000e-01 : f32
    %84 = vector.broadcast %cst_38 : f32 to vector<1x128xf32>
    %85 = arith.mulf %83, %84 : vector<1x128xf32>
    %cst_39 = arith.constant 9.99999974E-6 : f32
    %86 = vector.broadcast %cst_39 : f32 to vector<1x128xf32>
    %87 = arith.addf %85, %86 : vector<1x128xf32>
    %88 = math.rsqrt %87 : vector<1x128xf32>
    %89 = arith.mulf %71, %88 : vector<1x128xf32>
    %90 = vector.broadcast %89 : vector<1x128xf32> to vector<8x128xf32>
    %91 = arith.mulf %80, %90 : vector<8x128xf32>
    %92 = vector.broadcast %72 : vector<1x128xf32> to vector<8x128xf32>
    %93 = arith.addf %91, %92 : vector<8x128xf32>
    %94 = arith.truncf %93 : vector<8x128xf32> to vector<8x128xbf16>
    %cst_40 = arith.constant dense<0.000000e+00> : vector<8x128xf32>
    %95 = tpu.matmul %94, %73, %cst_40 {dimension_numbers = #tpu.dot_dimension_numbers<[1], [0], [0], [1], [0, 0, 1, 1], [], []>} : vector<8x128xbf16>, vector<128x128xbf16>, vector<8x128xf32> -> vector<8x128xf32>
    %96 = vector.broadcast %74 : vector<1x128xf32> to vector<8x128xf32>
    %97 = arith.addf %95, %96 : vector<8x128xf32>
    %c0_41 = arith.constant 0 : index
    %c0_42 = arith.constant 0 : index
    %98 = vector.load %arg10[%c0_41, %c0_42] : memref<8x128xf32, #tpu.memory_space<vmem>>, vector<8x128xf32>
    tpu.vector_store %arg10[%c0_41, %c0_42], %97 {strides = array<i32>} : memref<8x128xf32, #tpu.memory_space<vmem>>, vector<8x128xf32>,
    return
  }
}

</mosaic_0001>

<bundles_post_ra>
// kernel: tpu_custom_call.1
= control target key start
LH: loop header
LB: loop body
LE: loop exit
PB: predicated region body
PF: predicated region fallthrough
CT: control target
= control target key end

     0   :  { %16 = vsyncpa [#allocation5], 0  ;;  %s667_s0 = inlined_call_operand.<no memory space> [shape: s32[1], index: 0, kind: input, shape index: {}]   ;;  %s668_s1 = inlined_call_operand.hbm [shape: f32[8,32], index: 1, kind: input, shape index: {}]   ;;  %s669_s2 = inlined_call_operand.vmem [shape: f32[1,128], index: 2, kind: input, shape index: {}]   ;;  %s670_s3 = inlined_call_operand.vmem [shape: f32[1,128], index: 3, kind: input, shape index: {}]   ;;  %s671_s4 = inlined_call_operand.hbm [shape: bf16[128,128], index: 4, kind: input, shape index: {}]   ;;  %s672_s5 = inlined_call_operand.vmem [shape: f32[1,128], index: 5, kind: input, shape index: {}]   ;;  %s673_s6 = inlined_call_operand.vmem [shape: f32[1,128], index: 6, kind: input, shape index: {}]   ;;  %s674_s7 = inlined_call_operand.vmem [shape: f32[1,128], index: 7, kind: input, shape index: {}]   ;;  %s675_s8 = inlined_call_operand.hbm [shape: bf16[128,128], index: 8, kind: input, shape index: {}]   ;;  %s676_s9 = inlined_call_operand.vmem [shape: f32[1,128], index: 9, kind: input, shape index: {}]   ;;  %s677_s10 = inlined_call_operand.hbm [shape: f32[8,128], index: 10, kind: output, shape index: {}]  }
   0x1   :  { %17 = vsyncpa [#allocation8], 0  ;;  %s40_s15 = sshll.u32 %s671_s4, 4  ;;  %s41_s15 = int_to_ptr.hbm [resolvable:$true] %s40_s15 }
   0x2   :  { %18 = vsyncpa [#allocation6], 0  ;;  %s572_s16 = smov [#allocation7]   ;;  %s26_s20 = sshll.u32 %s668_s1, 4  ;;  %s27_s20 = int_to_ptr.hbm [resolvable:$true] %s26_s20 }
   0x3   :  { %s42_s17 = sshll.u32 %s572_s16, 4  ;;  %s573_s21 = smov 64   ;;  %s43_s17 = int_to_ptr.vmem [resolvable:$true] %s42_s17 }
   0x4   :  { %s574_s22 = smov 4   ;;  %s575_s23 = smov [#allocation4]  }
   0x5   :  { %48 = dma.hbm_to_vmem [thread:$0]  %s41_s15, 1024, %s43_s17, [#allocation8], %s573_s21, %s573_s21, %s574_s22  }
   0x6   :  { %s28_s24 = sshll.u32 %s575_s23, 4  ;;  %s59_s27 = sshll.u32 %s675_s8, 4  ;;  %s29_s24 = int_to_ptr.vmem [resolvable:$true] %s28_s24  ;;  %s60_s27 = int_to_ptr.hbm [resolvable:$true] %s59_s27 }
   0x7   :  { %31 = dma.hbm_to_vmem [thread:$0]  %s27_s20, 128, %s29_s24, [#allocation5]  }
   0x8   :  { %s576_s4 = smov [#allocation9]  }
   0x9   :  { %s61_s28 = sshll.u32 %s576_s4, 4  ;;  %s62_s28 = int_to_ptr.vmem [resolvable:$true] %s61_s28 }
   0xa   :  { %67 = dma.hbm_to_vmem [thread:$0]  %s60_s27, 1024, %s62_s28, [#allocation8], %s573_s21, %s573_s21, %s574_s22  }
   0xb   :  { %566 = dma.done.wait [#allocation5], 128  }
   0xc   :  { %567 = vsyncadd [#allocation5], 4294967168 }
   0xd   :  { %568 = dma.done.wait [#allocation8], 2048  }
   0xe   :  { %569 = vsyncadd [#allocation8], 4294965248  ;;  %v577_v0 = vmov 0.0   ;;  %v446_v1 = vld [vmem:[#allocation7 + $0x38] sm:$0xff]  ;;  %vm85_vm0 = vcmask 261120   ;;  %v445_v2 = vld [vmem:[#allocation7 + $0x30] sm:$0xff]  ;;  %v209_v42 = vlaneseq  ;;  %v216_v48 = vstv %s667_s0 }
   0xf   :  { %83 = vst [vmem:[#allocation2] sm:$0xff] %v577_v0  ;;  %195 = vmatpush.bf16.msra.mxu0 %v446_v1  ;;  %v84_v3 = vld [vmem:[#allocation4] sm:$0xff]  ;;  %v444_v4 = vld [vmem:[#allocation7 + $0x28] sm:$0xff]  ;;  %v443_v5 = vld [vmem:[#allocation7 + $0x20] sm:$0xff]  ;;  %s578_s17 = smov [#allocation10]   ;;  %s361_s20 = sshll.u32 %s677_s10, 4  ;;  %s362_s20 = int_to_ptr.hbm [resolvable:$true] %s361_s20 }
  0x10   :  { %86 = vst.msk [vmem:[#allocation2] sm:$0xff] %vm85_vm0, %v84_v3  ;;  %v442_v9 = vld [vmem:[#allocation7 + $0x18] sm:$0xff]  ;;  %v441_v12 = vld [vmem:[#allocation7 + $0x10] sm:$0xff]  ;;  %v440_v15 = vld [vmem:[#allocation7 + $0x8] sm:$0xff]  ;;  %v210_v43 = vshrl.u32 %v209_v42, 7  ;;  %v212_v44 = vand.u32 127, %v209_v42 }
  0x11   :  { %v439_v18 = vld [vmem:[#allocation7] sm:$0xff]  ;;  %v88_v33 = vld [vmem:[%s669_s2] sm:$0x1]  ;;  %v454_v0 = vld [vmem:[#allocation9 + $0x38] sm:$0xff] }
  0x12   :  { %v462_v38 = vld [vmem:[%s670_s3] ss:$0 sm:$0xff]  ;;  %v213_v45 = vmul.u32 128, %v210_v43  ;;  %340 = vmatpush.bf16.msra.mxu1 %v454_v0 }
  0x13   :  { %196 = vmatpush.bf16.msra.mxu0 %v445_v2  ;;  %v463_v58 = vld [vmem:[%s672_s5] ss:$0 sm:$0xff] }
  0x14   :  { %v214_v46 = vadd.s32 %v213_v45, %v212_v44 }
  0x16   :  { %v215_v47 = vmul.u32 2654435761, %v214_v46 }
  0x17   :  { %197 = vmatpush.bf16.msra.mxu0 %v444_v4  ;;  %v87_v6 = vld [vmem:[#allocation2] sm:$0xff] }
  0x18   :  { %v107_v7 = vrot.slane %v87_v6, 4  ;;  %v217_v49 = vadd.s32 %v216_v48, %v215_v47  ;;  %v453_v4 = vld [vmem:[#allocation9 + $0x30] sm:$0xff] }
  0x19   :  { %341 = vmatpush.bf16.msra.mxu1 %v453_v4 }
  0x1a   :  { %v108_v8 = vadd.f32 %v107_v7, %v87_v6  ;;  %v218_v50 = vxor.u32 1013904223, %v217_v49 }
  0x1b   :  { %198 = vmatpush.bf16.msra.mxu0 %v443_v5 }
  0x1c   :  { %v109_v10 = vrot.slane %v108_v8, 2  ;;  %v404_v51 = vshrl.u32 %v218_v50, 16 }
  0x1e   :  { %v110_v11 = vadd.f32 %v109_v10, %v108_v8  ;;  %v221_v52 = vxor.u32 %v404_v51, %v218_v50 }
  0x1f   :  { %199 = vmatpush.bf16.msra.mxu0 %v442_v9  ;;  %v451_v9 = vld [vmem:[#allocation9 + $0x20] sm:$0xff] }
  0x20   :  { %v111_v13 = vrot.slane %v110_v11, 1  ;;  %v222_v53 = vmul.u32 2246822507, %v221_v52 }
  0x22   :  { %v112_v14 = vadd.f32 %v111_v13, %v110_v11  ;;  %v405_v54 = vshrl.u32 %v222_v53, 13 }
  0x23   :  { %200 = vmatpush.bf16.msra.mxu0 %v441_v12  ;;  %v450_v12 = vld [vmem:[#allocation9 + $0x18] sm:$0xff] }
  0x24   :  { %v113_v16 = vmul.f32 0.125, %v112_v14  ;;  %v225_v55 = vxor.u32 %v405_v54, %v222_v53 }
  0x26   :  { %v114_v17 = vsub.f32 %v87_v6, %v113_v16  ;;  %v226_v56 = vmul.u32 3266489909, %v225_v55  ;;  %v452_v6 = vld [vmem:[#allocation9 + $0x28] sm:$0xff] }
  0x27   :  { %201 = vmatpush.bf16.msra.mxu0 %v440_v15  ;;  %342 = vmatpush.bf16.msra.mxu1 %v452_v6  ;;  %v449_v15 = vld [vmem:[#allocation9 + $0x10] sm:$0xff] }
  0x28   :  { %v115_v19 = vmul.f32 %v114_v17, %v114_v17  ;;  %v406_v57 = vshrl.u32 %v226_v56, 16 }
  0x2a   :  { %v116_v20 = vrot.slane %v115_v19, 4  ;;  %v229_v60 = vxor.u32 %v406_v57, %v226_v56 }
  0x2b   :  { %202 = vmatpush.bf16.msra.mxu0 %v439_v18  ;;  %343 = vmatpush.bf16.msra.mxu1 %v451_v9  ;;  %v448_v18 = vld [vmem:[#allocation9 + $0x8] sm:$0xff] }
  0x2c   :  { %v117_v21 = vadd.f32 %v116_v20, %v115_v19  ;;  %vm230_vm4 = vcmp.lt.s32.totalorder %v229_v60, 0 }
  0x2e   :  { %v118_v22 = vrot.slane %v117_v21, 2 }
  0x2f   :  { %344 = vmatpush.bf16.msra.mxu1 %v450_v12 }
  0x30   :  { %v119_v23 = vadd.f32 %v118_v22, %v117_v21  ;;  %v447_v21 = vld [vmem:[#allocation9] sm:$0xff] }
  0x32   :  { %v120_v24 = vrot.slane %v119_v23, 1 }
  0x33   :  { %345 = vmatpush.bf16.msra.mxu1 %v449_v15 }
  0x34   :  { %v121_v25 = vadd.f32 %v120_v24, %v119_v23 }
  0x36   :  { %v122_v26 = vmul.f32 0.125, %v121_v25 }
  0x37   :  { %346 = vmatpush.bf16.msra.mxu1 %v448_v18 }
  0x38   :  { %v123_v27 = vadd.f32 1e-05, %v122_v26 }
  0x3a   :  { %466 = vrsqrt.f32 %v123_v27  ;;  %vm130_vm1 = vweird.f32 %v123_v27 }
  0x3b   :  { %347 = vmatpush.bf16.msra.mxu1 %v447_v21 }
  0x40   :  { %v467_v28 = vpop.eup %466 }
  0x41   :  { %v125_v29 = vmul.f32 %v467_v28, %v123_v27  ;;  %vm131_vm2 = vweird.f32 %v467_v28 }
  0x42   :  { %vm132_vm3 = vmor %vm130_vm1, %vm131_vm2 }
  0x43   :  { %v126_v30 = vmul.f32 %v467_v28, %v125_v29 }
  0x45   :  { %v127_v31 = vmul.f32 0.5, %v126_v30 }
  0x47   :  { %v128_v32 = vsub.f32 1.5, %v127_v31 }
  0x49   :  { %v129_v34 = vmul.f32 %v467_v28, %v128_v32  ;;  %v233_v32 = vld [vmem:[%s673_s6] sm:$0x1]  ;;  %s359_s6 = sshll.u32 %s578_s17, 4  ;;  %s360_s6 = int_to_ptr.vmem [resolvable:$true] %s359_s6 }
  0x4b   :  { %v133_v35 = vsel %vm132_vm3, %v467_v28, %v129_v34 }
  0x4c   :  { %v134_v36 = vmul.f32 %v133_v35, %v88_v33 }
  0x4e   :  { %v136_v37 = vperm.slane %v134_v36, 0 }
  0x50   :  { %v138_v39 = vmul.f32 %v136_v37, %v114_v17  ;;  %v464_v37 = vld [vmem:[%s674_s7] ss:$0 sm:$0xff] }
  0x52   :  { %v142_v40 = vadd.f32 %v462_v38, %v138_v39 }
  0x54   :  { %v143_v41 = vpack.c.bf16 %v142_v40, %v142_v40 }
  0x56   :  { %203 = vmatmul.bf16.vlgmr.msra.gmra.mxu0 %v143_v41  ;;  %v465_v41 = vld [vmem:[%s676_s9] ss:$0 sm:$0xff] }
  0xd3   :  { %v204_v59 = vpop.f32.mrf.mxu0 }
  0xd4   :  { %v205_v61 = vadd.f32 %v463_v58, %v204_v59 }
  0xd6   :  { %v208_v62 = vmax.f32 %v205_v61, 0.0 }
  0xd8   :  { %v231_v63 = vmul.f32 2.0, %v208_v62 }
  0xda   :  { %v232_v1 = vsel %vm230_vm4, %v231_v63, 0.0 }
  0xdb   :  { %v252_v2 = vrot.slane %v232_v1, 4  ;;  %v206_v3 = vpop.f32.mrf.mxu0 }
  0xdd   :  { %v253_v5 = vadd.f32 %v252_v2, %v232_v1 }
  0xdf   :  { %v254_v7 = vrot.slane %v253_v5, 2 }
  0xe1   :  { %v255_v8 = vadd.f32 %v254_v7, %v253_v5 }
  0xe3   :  { %v256_v10 = vrot.slane %v255_v8, 1 }
  0xe5   :  { %v257_v11 = vadd.f32 %v256_v10, %v255_v8 }
  0xe7   :  { %v258_v13 = vmul.f32 0.125, %v257_v11 }
  0xe9   :  { %v259_v14 = vsub.f32 %v232_v1, %v258_v13 }
  0xeb   :  { %v260_v16 = vmul.f32 %v259_v14, %v259_v14 }
  0xed   :  { %v261_v17 = vrot.slane %v260_v16, 4 }
  0xef   :  { %v262_v19 = vadd.f32 %v261_v17, %v260_v16 }
  0xf1   :  { %v263_v20 = vrot.slane %v262_v19, 2 }
  0xf3   :  { %v264_v22 = vadd.f32 %v263_v20, %v262_v19 }
  0xf5   :  { %v265_v23 = vrot.slane %v264_v22, 1 }
  0xf7   :  { %v266_v24 = vadd.f32 %v265_v23, %v264_v22 }
  0xf9   :  { %v267_v25 = vmul.f32 0.125, %v266_v24 }
  0xfb   :  { %v268_v26 = vadd.f32 1e-05, %v267_v25 }
  0xfd   :  { %468 = vrsqrt.f32 %v268_v26  ;;  %vm275_vm6 = vweird.f32 %v268_v26 }
 0x103   :  { %v469_v27 = vpop.eup %468 }
 0x104   :  { %v270_v28 = vmul.f32 %v469_v27, %v268_v26  ;;  %vm276_vm5 = vweird.f32 %v469_v27 }
 0x105   :  { %vm277_vm7 = vmor %vm275_vm6, %vm276_vm5 }
 0x106   :  { %v271_v29 = vmul.f32 %v469_v27, %v270_v28 }
 0x108   :  { %v272_v30 = vmul.f32 0.5, %v271_v29 }
 0x10a   :  { %v273_v31 = vsub.f32 1.5, %v272_v30 }
 0x10c   :  { %v274_v33 = vmul.f32 %v469_v27, %v273_v31 }
 0x10e   :  { %v278_v34 = vsel %vm277_vm7, %v469_v27, %v274_v33 }
 0x10f   :  { %v279_v35 = vmul.f32 %v278_v34, %v233_v32 }
 0x111   :  { %v281_v36 = vperm.slane %v279_v35, 0 }
 0x113   :  { %v283_v38 = vmul.f32 %v281_v36, %v259_v14 }
 0x115   :  { %v287_v39 = vadd.f32 %v464_v37, %v283_v38 }
 0x117   :  { %v288_v40 = vpack.c.bf16 %v287_v39, %v287_v39 }
 0x119   :  { %348 = vmatmul.bf16.vlgmr.msra.gmra.mxu1 %v288_v40 }
 0x196   :  { %v349_v42 = vpop.f32.mrf.mxu1 }
 0x197   :  { %v350_v43 = vadd.f32 %v465_v41, %v349_v42 }
 0x199   :  { %353 = vst [vmem:[#allocation10] sm:$0xff] %v350_v43 }
 0x19a   :  { %364 = dma.vmem_to_hbm [thread:$0]  %s360_s6, 128, %s362_s20, [#allocation6]  }
 0x19e   :  { %v351_v44 = vpop.f32.mrf.mxu1 }
 0x19f   :  { %570 = dma.done.wait [#allocation6], 128  }
 0x1a0   :  { %571 = vsyncadd [#allocation6], 4294967168 }
 0x1a1   :  { %369 = vsyncpa [#allocation5], 1 }
 0x1a2   :  { %370 = vsyncpa [#allocation8], 1 }
 0x1a3   :  { %371 = vsyncpa [#allocation6], 1 }

</bundles_post_ra>
